<compile_context>
chip_gen: v5e
topology: v5e:2x2
jax: 0.10.0
libtpu: 0.0.40
codegen_flags: <defaults>
</compile_context>

<pallas_src>
import functools

import jax
import jax.numpy as jnp
from jax import lax
from jax.experimental import pallas as pl
from jax.experimental.pallas import tpu as pltpu

BN_EPS = 1e-5          # nn.BatchNorm2d default eps
NEG_SLOPE = 0.01       # F.leaky_relu default negative_slope


def _leaky(z):
    return jnp.where(z >= 0, z, NEG_SLOPE * z)


def _bottleneck_kernel(x_ref, w1_ref, b1_ref, w2_ref, b2_ref, w3_ref, b3_ref,
                       out_ref, *, h, w, cin):
    hw = h * w
    cout = out_ref.shape[0]
    cdtype = x_ref.dtype

    x = x_ref[...]                                                    # (Cin, HW)

    # ---- conv1 (1x1, BN1 scale pre-folded into w1) + bias + leaky_relu ----
    h1 = jnp.dot(w1_ref[...], x, preferred_element_type=jnp.float32)  # (P, HW)
    h1 = _leaky(h1 + b1_ref[...]).astype(cdtype)

    # ---- conv2 (3x3, stride 1, pad 1) + bias + leaky_relu -----------------
    # Single MXU dot over all 9 taps.  Each tap is a static slice of a
    # (w+1)-zero-padded copy of h1 (vertical out-of-range reads hit the zero
    # pad for free).  Horizontal wrap is handled by two source-side column
    # masks shared by every tap of the same dx (select form, 2 selects total).
    p = h1.shape[0]
    xpos = lax.broadcasted_iota(jnp.int32, (1, hw), 1) % w
    zero = jnp.zeros_like(h1)
    h1_by_dx = {
        -1: jnp.where(xpos == (w - 1), zero, h1),   # dx=-1 taps never read col w-1
        0: h1,
        1: jnp.where(xpos == 0, zero, h1),          # dx=+1 taps never read col 0
    }
    pad = jnp.zeros((p, w + 1), cdtype)
    padded = {dx: jnp.concatenate([pad, v, pad], axis=1)
              for dx, v in h1_by_dx.items()}
    taps = []
    for dy in (-1, 0, 1):
        for dx in (-1, 0, 1):
            s = (w + 1) + dy * w + dx               # static offset in padded buf
            taps.append(padded[dx][:, s:s + hw])
    stacked = jnp.concatenate(taps, axis=0)                           # (9P, HW)

    h2 = jnp.dot(w2_ref[...], stacked, preferred_element_type=jnp.float32)
    h2 = _leaky(h2 + b2_ref[...]).astype(cdtype)                      # (P, HW)

    # ---- conv3 (1x1, BN3 scale pre-folded into w3) + bias -----------------
    h3 = jnp.dot(w3_ref[...], h2, preferred_element_type=jnp.float32)
    h3 = h3 + b3_ref[...]                                             # (Cout, HW)

    # ---- shortcut (AvgPoolShortCut stride=1 -> channel zero-pad) + leaky --
    # Two-slab store: identity add on the first cin channels, plain activation
    # on the zero-padded channels (no zeros concat, no wasted adds).
    if cout > cin:
        out_ref[:cin, :] = _leaky(h3[:cin, :] + x).astype(out_ref.dtype)
        out_ref[cin:, :] = _leaky(h3[cin:, :]).astype(out_ref.dtype)
    else:
        out_ref[...] = _leaky(h3 + x).astype(out_ref.dtype)


def bottleneck_forward(x, params, *, planes):
    """Fused Bottleneck forward (stride=1, mod=True, inference-mode BN)."""
    n, cin, h, w = x.shape
    cout = 4 * planes
    hw = h * w
    cdtype = x.dtype

    # Fold inference BatchNorm into a per-output-channel scale (multiplied into
    # the conv weights here, on the host) and a bias (added in-kernel).
    def fold_bn(g, b, m, v):
        s = (g.astype(jnp.float32)
             * lax.rsqrt(v.astype(jnp.float32) + BN_EPS))
        bias = (b.astype(jnp.float32) - m.astype(jnp.float32) * s)
        return s, bias.reshape(-1, 1)

    s1, b1 = fold_bn(params['bn1_gamma'], params['bn1_beta'],
                     params['bn1_mean'], params['bn1_var'])
    s2, b2 = fold_bn(params['bn2_gamma'], params['bn2_beta'],
                     params['bn2_mean'], params['bn2_var'])
    s3, b3 = fold_bn(params['bn3_gamma'], params['bn3_beta'],
                     params['bn3_mean'], params['bn3_var'])

    w1 = (params['conv1_w'][:, :, 0, 0].astype(jnp.float32)
          * s1[:, None]).astype(cdtype)                               # (P, Cin)
    # OIHW -> (O, ky, kx, I) -> (O, 9*I); column blocks ordered like the
    # in-kernel tap stacking (dy outer, dx inner).
    w2 = (jnp.transpose(params['conv2_w'], (0, 2, 3, 1))
          .reshape(planes, 9 * planes).astype(jnp.float32)
          * s2[:, None]).astype(cdtype)                               # (P, 9P)
    w3 = (params['conv3_w'][:, :, 0, 0].astype(jnp.float32)
          * s3[:, None]).astype(cdtype)                               # (Cout, P)

    x3 = x.reshape(n, cin, hw)   # pure reshape: HW -> lanes, no transpose

    kernel = functools.partial(_bottleneck_kernel, h=h, w=w, cin=cin)

    out = pl.pallas_call(
        kernel,
        out_shape=jax.ShapeDtypeStruct((n, cout, hw), cdtype),
        grid=(n,),
        in_specs=[
            pl.BlockSpec((pl.Squeezed(), cin, hw), lambda i: (i, 0, 0)),
            pl.BlockSpec((planes, cin), lambda i: (0, 0)),
            pl.BlockSpec((planes, 1), lambda i: (0, 0)),
            pl.BlockSpec((planes, 9 * planes), lambda i: (0, 0)),
            pl.BlockSpec((planes, 1), lambda i: (0, 0)),
            pl.BlockSpec((cout, planes), lambda i: (0, 0)),
            pl.BlockSpec((cout, 1), lambda i: (0, 0)),
        ],
        out_specs=pl.BlockSpec((pl.Squeezed(), cout, hw), lambda i: (i, 0, 0)),
        compiler_params=pltpu.CompilerParams(
            dimension_semantics=("parallel",),
            vmem_limit_bytes=48 * 1024 * 1024,
        ),
    )(x3, w1, b1, w2, b2, w3, b3)

    return out.reshape(n, cout, h, w)


# ----------------------------- pure-JAX reference -----------------------------
def _conv2d(x, w, stride=1, padding=0):
    return lax.conv_general_dilated(
        x, w, window_strides=(stride, stride),
        padding=[(padding, padding), (padding, padding)],
        dimension_numbers=('NCHW', 'OIHW', 'NCHW'),
        precision=lax.Precision.HIGHEST)


def _reference(x, params, *, planes):
    def bn(z, g, b, m, v):
        inv = lax.rsqrt(v + BN_EPS)
        return ((z - m[None, :, None, None]) * (g * inv)[None, :, None, None]
                + b[None, :, None, None])

    out = _leaky(bn(_conv2d(x, params['conv1_w']),
                    params['bn1_gamma'], params['bn1_beta'],
                    params['bn1_mean'], params['bn1_var']))
    out = _leaky(bn(_conv2d(out, params['conv2_w'], padding=1),
                    params['bn2_gamma'], params['bn2_beta'],
                    params['bn2_mean'], params['bn2_var']))
    out = bn(_conv2d(out, params['conv3_w']),
             params['bn3_gamma'], params['bn3_beta'],
             params['bn3_mean'], params['bn3_var'])
    # AvgPoolShortCut(stride=1): H even -> avg_pool2d(x, 1, 1) == x, then pad channels.
    cout = 4 * planes
    cin = x.shape[1]
    sc = jnp.pad(x, ((0, 0), (0, cout - cin), (0, 0), (0, 0))) if cout > cin else x
    return _leaky(out + sc)


if __name__ == "__main__":
    key = jax.random.PRNGKey(0)
    N, IN_PLANES, PLANES, H, W = 2, 8, 4, 16, 16
    COUT = 4 * PLANES
    ks = jax.random.split(key, 16)

    x = jax.random.normal(ks[0], (N, IN_PLANES, H, W), jnp.float32)
    params = dict(
        conv1_w=0.25 * jax.random.normal(ks[1], (PLANES, IN_PLANES, 1, 1), jnp.float32),
        conv2_w=0.25 * jax.random.normal(ks[2], (PLANES, PLANES, 3, 3), jnp.float32),
        conv3_w=0.25 * jax.random.normal(ks[3], (COUT, PLANES, 1, 1), jnp.float32),
        bn1_gamma=jax.random.uniform(ks[4], (PLANES,), jnp.float32, 0.5, 1.5),
        bn1_beta=0.1 * jax.random.normal(ks[5], (PLANES,), jnp.float32),
        bn1_mean=0.1 * jax.random.normal(ks[6], (PLANES,), jnp.float32),
        bn1_var=jax.random.uniform(ks[7], (PLANES,), jnp.float32, 0.5, 1.5),
        bn2_gamma=jax.random.uniform(ks[8], (PLANES,), jnp.float32, 0.5, 1.5),
        bn2_beta=0.1 * jax.random.normal(ks[9], (PLANES,), jnp.float32),
        bn2_mean=0.1 * jax.random.normal(ks[10], (PLANES,), jnp.float32),
        bn2_var=jax.random.uniform(ks[11], (PLANES,), jnp.float32, 0.5, 1.5),
        bn3_gamma=jax.random.uniform(ks[12], (COUT,), jnp.float32, 0.5, 1.5),
        bn3_beta=0.1 * jax.random.normal(ks[13], (COUT,), jnp.float32),
        bn3_mean=0.1 * jax.random.normal(ks[14], (COUT,), jnp.float32),
        bn3_var=jax.random.uniform(ks[15], (COUT,), jnp.float32, 0.5, 1.5),
    )

    y = bottleneck_forward(x, params, planes=PLANES)
    y = jax.block_until_ready(y)

    y_ref = _reference(x, params, planes=PLANES)
    assert y.shape == (N, COUT, H, W), y.shape
    err = float(jnp.max(jnp.abs(y - y_ref)))
    assert bool(jnp.allclose(y, y_ref, atol=2e-3, rtol=2e-3)), f"max abs err = {err}"

    print("KERNEL_OK")
</pallas_src>

<mosaic_0001>
module attributes {stable_mosaic.version = 11 : i64} {
  func.func @_bottleneck_kernel(%arg0: i32, %arg1: memref<1x8x256xf32, #tpu.memory_space<vmem>>, %arg2: memref<4x8xf32, #tpu.memory_space<vmem>>, %arg3: memref<4x1xf32, #tpu.memory_space<vmem>>, %arg4: memref<4x36xf32, #tpu.memory_space<vmem>>, %arg5: memref<4x1xf32, #tpu.memory_space<vmem>>, %arg6: memref<16x4xf32, #tpu.memory_space<vmem>>, %arg7: memref<16x1xf32, #tpu.memory_space<vmem>>, %arg8: memref<1x16x256xf32, #tpu.memory_space<vmem>>) attributes {dimension_semantics = [#tpu.dimension_semantics<parallel>], iteration_bounds = array<i64: 2>, scalar_prefetch = 0 : i64, scratch_operands = 0 : i64, tpu.core_type = #tpu.core_type<tc>, window_params = [{transform_indices = @transform_0, window_bounds = array<i64: 1, 8, 256>}, {pipeline_mode = #tpu.pipeline_mode<synchronous>, transform_indices = @transform_1, window_bounds = array<i64: 4, 8>}, {pipeline_mode = #tpu.pipeline_mode<synchronous>, transform_indices = @transform_2, window_bounds = array<i64: 4, 1>}, {pipeline_mode = #tpu.pipeline_mode<synchronous>, transform_indices = @transform_3, window_bounds = array<i64: 4, 36>}, {pipeline_mode = #tpu.pipeline_mode<synchronous>, transform_indices = @transform_4, window_bounds = array<i64: 4, 1>}, {pipeline_mode = #tpu.pipeline_mode<synchronous>, transform_indices = @transform_5, window_bounds = array<i64: 16, 4>}, {pipeline_mode = #tpu.pipeline_mode<synchronous>, transform_indices = @transform_6, window_bounds = array<i64: 16, 1>}, {transform_indices = @transform_7, window_bounds = array<i64: 1, 16, 256>}]} {
    %c0 = arith.constant 0 : index
    %c0_0 = arith.constant 0 : index
    %c0_1 = arith.constant 0 : index
    %0 = vector.load %arg1[%c0, %c0_0, %c0_1] : memref<1x8x256xf32, #tpu.memory_space<vmem>>, vector<1x8x256xf32>
    %1 = vector.shape_cast %0 : vector<1x8x256xf32> to vector<8x256xf32>
    %c0_2 = arith.constant 0 : index
    %c0_3 = arith.constant 0 : index
    %2 = vector.load %arg2[%c0_2, %c0_3] : memref<4x8xf32, #tpu.memory_space<vmem>>, vector<4x8xf32>
    %cst = arith.constant dense<0.000000e+00> : vector<4x256xf32>
    %3 = tpu.matmul %2, %1, %cst {dimension_numbers = #tpu.dot_dimension_numbers<[1], [0], [0], [1], [0, 0, 1, 1], [], []>} : vector<4x8xf32>, vector<8x256xf32>, vector<4x256xf32> -> vector<4x256xf32>
    %c0_4 = arith.constant 0 : index
    %c0_5 = arith.constant 0 : index
    %4 = vector.load %arg3[%c0_4, %c0_5] : memref<4x1xf32, #tpu.memory_space<vmem>>, vector<4x1xf32>
    %5 = vector.broadcast %4 : vector<4x1xf32> to vector<4x256xf32>
    %6 = arith.addf %3, %5 : vector<4x256xf32>
    %cst_6 = arith.constant 0.000000e+00 : f32
    %7 = vector.broadcast %cst_6 : f32 to vector<4x256xf32>
    %8 = arith.cmpf oge, %6, %7 : vector<4x256xf32>
    %cst_7 = arith.constant 0.00999999977 : f32
    %9 = vector.broadcast %cst_7 : f32 to vector<4x256xf32>
    %10 = arith.mulf %9, %6 : vector<4x256xf32>
    %11 = arith.select %8, %6, %10 : vector<4x256xi1>, vector<4x256xf32>
    %12 = tpu.iota {dimensions = array<i32: 1>} : vector<1x256xi32>
    %c16_i32 = arith.constant 16 : i32
    %c0_i32 = arith.constant 0 : i32
    %13 = arith.cmpi eq, %c16_i32, %c0_i32 : i32
    %c1_i32 = arith.constant 1 : i32
    %14 = arith.select %13, %c1_i32, %c16_i32 : i32
    %15 = vector.broadcast %14 : i32 to vector<1x256xi32>
    %16 = arith.remsi %12, %15 : vector<1x256xi32>
    %c0_i32_8 = arith.constant 0 : i32
    %17 = vector.broadcast %c0_i32_8 : i32 to vector<1x256xi32>
    %18 = arith.cmpi ne, %16, %17 : vector<1x256xi32>
    %c0_i32_9 = arith.constant 0 : i32
    %19 = vector.broadcast %c0_i32_9 : i32 to vector<1x256xi32>
    %20 = arith.cmpi slt, %16, %19 : vector<1x256xi32>
    %c0_i32_10 = arith.constant 0 : i32
    %21 = arith.cmpi slt, %14, %c0_i32_10 : i32
    %22 = vector.broadcast %21 : i1 to vector<1x256xi1>
    %23 = vector.broadcast %22 : vector<1x256xi1> to vector<1x256xi1>
    %24 = arith.xori %20, %23 : vector<1x256xi1>
    %25 = arith.andi %24, %18 : vector<1x256xi1>
    %26 = vector.broadcast %14 : i32 to vector<1x256xi32>
    %27 = arith.addi %16, %26 : vector<1x256xi32>
    %28 = arith.select %25, %27, %16 : vector<1x256xi1>, vector<1x256xi32>
    %cst_11 = arith.constant 0.000000e+00 : f32
    %29 = vector.broadcast %cst_11 : f32 to vector<4x256xf32>
    %c15_i32 = arith.constant 15 : i32
    %30 = vector.broadcast %c15_i32 : i32 to vector<1x256xi32>
    %31 = arith.cmpi eq, %28, %30 : vector<1x256xi32>
    %32 = vector.shape_cast %31 : vector<1x256xi1> to vector<1x256xi1>
    %33 = vector.broadcast %32 : vector<1x256xi1> to vector<4x256xi1>
    %34 = arith.select %33, %29, %11 : vector<4x256xi1>, vector<4x256xf32>
    %c0_i32_12 = arith.constant 0 : i32
    %35 = vector.broadcast %c0_i32_12 : i32 to vector<1x256xi32>
    %36 = arith.cmpi eq, %28, %35 : vector<1x256xi32>
    %37 = vector.shape_cast %36 : vector<1x256xi1> to vector<1x256xi1>
    %38 = vector.broadcast %37 : vector<1x256xi1> to vector<4x256xi1>
    %39 = arith.select %38, %29, %11 : vector<4x256xi1>, vector<4x256xf32>
    %cst_13 = arith.constant 0.000000e+00 : f32
    %40 = vector.broadcast %cst_13 : f32 to vector<4x17xf32>
    %41 = tpu.concatenate %40, %34, %40 in 1 : vector<4x17xf32>, vector<4x256xf32>, vector<4x17xf32> -> vector<4x290xf32>
    %42 = tpu.concatenate %40, %11, %40 in 1 : vector<4x17xf32>, vector<4x256xf32>, vector<4x17xf32> -> vector<4x290xf32>
    %43 = tpu.concatenate %40, %39, %40 in 1 : vector<4x17xf32>, vector<4x256xf32>, vector<4x17xf32> -> vector<4x290xf32>
    %44 = vector.extract_strided_slice %41 {offsets = [0, 0], sizes = [4, 256], strides = [1, 1]} : vector<4x290xf32> to vector<4x256xf32>
    %45 = vector.extract_strided_slice %42 {offsets = [0, 1], sizes = [4, 256], strides = [1, 1]} : vector<4x290xf32> to vector<4x256xf32>
    %46 = vector.extract_strided_slice %43 {offsets = [0, 2], sizes = [4, 256], strides = [1, 1]} : vector<4x290xf32> to vector<4x256xf32>
    %47 = vector.extract_strided_slice %41 {offsets = [0, 16], sizes = [4, 256], strides = [1, 1]} : vector<4x290xf32> to vector<4x256xf32>
    %48 = vector.extract_strided_slice %42 {offsets = [0, 17], sizes = [4, 256], strides = [1, 1]} : vector<4x290xf32> to vector<4x256xf32>
    %49 = vector.extract_strided_slice %43 {offsets = [0, 18], sizes = [4, 256], strides = [1, 1]} : vector<4x290xf32> to vector<4x256xf32>
    %50 = vector.extract_strided_slice %41 {offsets = [0, 32], sizes = [4, 256], strides = [1, 1]} : vector<4x290xf32> to vector<4x256xf32>
    %51 = vector.extract_strided_slice %42 {offsets = [0, 33], sizes = [4, 256], strides = [1, 1]} : vector<4x290xf32> to vector<4x256xf32>
    %52 = vector.extract_strided_slice %43 {offsets = [0, 34], sizes = [4, 256], strides = [1, 1]} : vector<4x290xf32> to vector<4x256xf32>
    %53 = tpu.concatenate %44, %45, %46, %47, %48, %49, %50, %51, %52 in 0 : vector<4x256xf32>, vector<4x256xf32>, vector<4x256xf32>, vector<4x256xf32>, vector<4x256xf32>, vector<4x256xf32>, vector<4x256xf32>, vector<4x256xf32>, vector<4x256xf32> -> vector<36x256xf32>
    %c0_14 = arith.constant 0 : index
    %c0_15 = arith.constant 0 : index
    %54 = vector.load %arg4[%c0_14, %c0_15] : memref<4x36xf32, #tpu.memory_space<vmem>>, vector<4x36xf32>
    %cst_16 = arith.constant dense<0.000000e+00> : vector<4x256xf32>
    %55 = tpu.matmul %54, %53, %cst_16 {dimension_numbers = #tpu.dot_dimension_numbers<[1], [0], [0], [1], [0, 0, 1, 1], [], []>} : vector<4x36xf32>, vector<36x256xf32>, vector<4x256xf32> -> vector<4x256xf32>
    %c0_17 = arith.constant 0 : index
    %c0_18 = arith.constant 0 : index
    %56 = vector.load %arg5[%c0_17, %c0_18] : memref<4x1xf32, #tpu.memory_space<vmem>>, vector<4x1xf32>
    %57 = vector.broadcast %56 : vector<4x1xf32> to vector<4x256xf32>
    %58 = arith.addf %55, %57 : vector<4x256xf32>
    %cst_19 = arith.constant 0.000000e+00 : f32
    %59 = vector.broadcast %cst_19 : f32 to vector<4x256xf32>
    %60 = arith.cmpf oge, %58, %59 : vector<4x256xf32>
    %cst_20 = arith.constant 0.00999999977 : f32
    %61 = vector.broadcast %cst_20 : f32 to vector<4x256xf32>
    %62 = arith.mulf %61, %58 : vector<4x256xf32>
    %63 = arith.select %60, %58, %62 : vector<4x256xi1>, vector<4x256xf32>
    %c0_21 = arith.constant 0 : index
    %c0_22 = arith.constant 0 : index
    %64 = vector.load %arg6[%c0_21, %c0_22] : memref<16x4xf32, #tpu.memory_space<vmem>>, vector<16x4xf32>
    %cst_23 = arith.constant dense<0.000000e+00> : vector<16x256xf32>
    %65 = tpu.matmul %64, %63, %cst_23 {dimension_numbers = #tpu.dot_dimension_numbers<[1], [0], [0], [1], [0, 0, 1, 1], [], []>} : vector<16x4xf32>, vector<4x256xf32>, vector<16x256xf32> -> vector<16x256xf32>
    %c0_24 = arith.constant 0 : index
    %c0_25 = arith.constant 0 : index
    %66 = vector.load %arg7[%c0_24, %c0_25] : memref<16x1xf32, #tpu.memory_space<vmem>>, vector<16x1xf32>
    %67 = vector.broadcast %66 : vector<16x1xf32> to vector<16x256xf32>
    %68 = arith.addf %65, %67 : vector<16x256xf32>
    %69 = vector.extract_strided_slice %68 {offsets = [0, 0], sizes = [8, 256], strides = [1, 1]} : vector<16x256xf32> to vector<8x256xf32>
    %70 = arith.addf %69, %1 : vector<8x256xf32>
    %cst_26 = arith.constant 0.000000e+00 : f32
    %71 = vector.broadcast %cst_26 : f32 to vector<8x256xf32>
    %72 = arith.cmpf oge, %70, %71 : vector<8x256xf32>
    %cst_27 = arith.constant 0.00999999977 : f32
    %73 = vector.broadcast %cst_27 : f32 to vector<8x256xf32>
    %74 = arith.mulf %73, %70 : vector<8x256xf32>
    %75 = arith.select %72, %70, %74 : vector<8x256xi1>, vector<8x256xf32>
    %c0_28 = arith.constant 0 : index
    %c0_29 = arith.constant 0 : index
    %c0_30 = arith.constant 0 : index
    %76 = vector.load %arg8[%c0_28, %c0_29, %c0_30] : memref<1x16x256xf32, #tpu.memory_space<vmem>>, vector<1x8x256xf32>
    %77 = vector.shape_cast %76 : vector<1x8x256xf32> to vector<8x256xf32>
    %78 = vector.shape_cast %75 : vector<8x256xf32> to vector<1x8x256xf32>
    tpu.vector_store %arg8[%c0_28, %c0_29, %c0_30], %78 {strides = array<i32>} : memref<1x16x256xf32, #tpu.memory_space<vmem>>, vector<1x8x256xf32>,
    %79 = vector.extract_strided_slice %68 {offsets = [8, 0], sizes = [8, 256], strides = [1, 1]} : vector<16x256xf32> to vector<8x256xf32>
    %cst_31 = arith.constant 0.000000e+00 : f32
    %80 = vector.broadcast %cst_31 : f32 to vector<8x256xf32>
    %81 = arith.cmpf oge, %79, %80 : vector<8x256xf32>
    %cst_32 = arith.constant 0.00999999977 : f32
    %82 = vector.broadcast %cst_32 : f32 to vector<8x256xf32>
    %83 = arith.mulf %82, %79 : vector<8x256xf32>
    %84 = arith.select %81, %79, %83 : vector<8x256xi1>, vector<8x256xf32>
    %c0_33 = arith.constant 0 : index
    %c8 = arith.constant 8 : index
    %c0_34 = arith.constant 0 : index
    %85 = vector.load %arg8[%c0_33, %c8, %c0_34] : memref<1x16x256xf32, #tpu.memory_space<vmem>>, vector<1x8x256xf32>
    %86 = vector.shape_cast %85 : vector<1x8x256xf32> to vector<8x256xf32>
    %87 = vector.shape_cast %84 : vector<8x256xf32> to vector<1x8x256xf32>
    tpu.vector_store %arg8[%c0_33, %c8, %c0_34], %87 {strides = array<i32>} : memref<1x16x256xf32, #tpu.memory_space<vmem>>, vector<1x8x256xf32>,
    return
  }
  func.func @transform_0(%arg0: i32) -> (i32, i32, i32) {
    %c0_i32 = arith.constant 0 : i32
    %c0_i32_0 = arith.constant 0 : i32
    %c0_i32_1 = arith.constant 0 : i32
    return %arg0, %c0_i32, %c0_i32_0 : i32, i32, i32
  }
  func.func @transform_1(%arg0: i32) -> (i32, i32) {
    %c0_i32 = arith.constant 0 : i32
    %c0_i32_0 = arith.constant 0 : i32
    %c0_i32_1 = arith.constant 0 : i32
    return %c0_i32, %c0_i32_0 : i32, i32
  }
  func.func @transform_2(%arg0: i32) -> (i32, i32) {
    %c0_i32 = arith.constant 0 : i32
    %c0_i32_0 = arith.constant 0 : i32
    %c0_i32_1 = arith.constant 0 : i32
    return %c0_i32, %c0_i32_0 : i32, i32
  }
  func.func @transform_3(%arg0: i32) -> (i32, i32) {
    %c0_i32 = arith.constant 0 : i32
    %c0_i32_0 = arith.constant 0 : i32
    %c0_i32_1 = arith.constant 0 : i32
    return %c0_i32, %c0_i32_0 : i32, i32
  }
  func.func @transform_4(%arg0: i32) -> (i32, i32) {
    %c0_i32 = arith.constant 0 : i32
    %c0_i32_0 = arith.constant 0 : i32
    %c0_i32_1 = arith.constant 0 : i32
    return %c0_i32, %c0_i32_0 : i32, i32
  }
  func.func @transform_5(%arg0: i32) -> (i32, i32) {
    %c0_i32 = arith.constant 0 : i32
    %c0_i32_0 = arith.constant 0 : i32
    %c0_i32_1 = arith.constant 0 : i32
    return %c0_i32, %c0_i32_0 : i32, i32
  }
  func.func @transform_6(%arg0: i32) -> (i32, i32) {
    %c0_i32 = arith.constant 0 : i32
    %c0_i32_0 = arith.constant 0 : i32
    %c0_i32_1 = arith.constant 0 : i32
    return %c0_i32, %c0_i32_0 : i32, i32
  }
  func.func @transform_7(%arg0: i32) -> (i32, i32, i32) {
    %c0_i32 = arith.constant 0 : i32
    %c0_i32_0 = arith.constant 0 : i32
    %c0_i32_1 = arith.constant 0 : i32
    return %arg0, %c0_i32, %c0_i32_0 : i32, i32, i32
  }
}

</mosaic_0001>

<bundles_post_ra>
// kernel: tpu_custom_call.1
= control target key start
LH: loop header
LB: loop body
LE: loop exit
PB: predicated region body
PF: predicated region fallthrough
CT: control target
= control target key end

     0   :  { %12 = vsyncpa [#allocation3], 0  ;;  %s1160_s0 = inlined_call_operand.vmem [shape: f32[2,8,256], index: 0, kind: input, shape index: {}]   ;;  %s1161_s1 = inlined_call_operand.vmem [shape: f32[4,8], index: 1, kind: input, shape index: {}]   ;;  %s1162_s2 = inlined_call_operand.vmem [shape: f32[4,1], index: 2, kind: input, shape index: {}]   ;;  %s1163_s3 = inlined_call_operand.vmem [shape: f32[4,36], index: 3, kind: input, shape index: {}]   ;;  %s1164_s4 = inlined_call_operand.vmem [shape: f32[4,1], index: 4, kind: input, shape index: {}]   ;;  %s1165_s5 = inlined_call_operand.vmem [shape: f32[16,4], index: 5, kind: input, shape index: {}]   ;;  %s1166_s6 = inlined_call_operand.vmem [shape: f32[16,1], index: 6, kind: input, shape index: {}]   ;;  %s1167_s7 = inlined_call_operand.hbm [shape: f32[2,16,256], index: 7, kind: output, shape index: {}]  }
   0x1   :  { %14 = vsyncpa [#allocation3 + $0x1], 0  ;;  %s995_s24 = smov 0   ;;  %s997_s25 = smov 0  }
   0x2   :  { %s999_s26 = smov 0   ;;  %s1001_s27 = smov 0  }
   0x3 LB: > { %s1016_s28 = sadd.s32 4294967295, %s941_s27   ;;  %s754_s29 = sadd.s32 4294967294, %s941_s27   ;;  %s941_s27 = sphi %s1001_s27, %s1173_s27   ;;  %s937_s26 = sphi %s999_s26, %s1172_s26   ;;  %s933_s25 = sphi %s997_s25, %s1171_s25   ;;  %s929_s24 = sphi %s995_s24, %s1170_s24  }
   0x4   : > { %s1020_s30 = sadd.s32 1, %s941_s27   ;;  %s179_s8 = sadd.s32 1, %s937_s26 }
   0x5   : > { %s176_s9 = ssub.s32 %s941_s27, %s1020_s30  ;;  %p189_p0 = scmp.ne.s32.totalorder %s937_s26, %s933_s25 }
   0x6   : > { %p177_p1 = scmp.eq.s32.totalorder %s176_s9, 0  ;;  %p190_p2 = scmp.eq.s32.totalorder %s1016_s28, 1 }
   0x7   : > { %p195_p3 = scmp.ne.s32.totalorder %s933_s25, %s929_s24  ;;  %p196_p4 = scmp.eq.s32.totalorder %s754_s29, 1 }
   0x8   : > { %s1031_s10 = scalar_select %p177_p1, %s937_s26, %s179_s8  }
   0x9   : > { %p1033_p5 = por %p190_p2, %p189_p0  ;;  %p1037_p6 = por %p196_p4, %p195_p3 }
   0xa   : > { %p757_p7 = scmp.ge.s32.totalorder %s941_s27, 1  ;;  %p240_p8 = scmp.lt.s32.totalorder %s941_s27, 3 }
   0xc   : > { %p241_p9 = pnand %p757_p7, %p240_p8 }
   0xd   : > { %p272_p10 = scmp.lt.s32.totalorder (!%p241_p9), %s1016_s28, 1  ;;  %s944_s22 = smov (!%p241_p9), 17  }
   0xe   : > { %244 = sbr.rel (%p241_p9) target bundleno = 720 (0x2d0), region = 48  ;;  %s945_s23 = smov (!%p241_p9), 96  }
   0xf   : > { %s946_s29 = smov (!%p241_p9), 111   ;;  %s947_s8 = smov (!%p241_p9), 126  }
  0x10   : > { %s948_s9 = smov (!%p241_p9), 110   ;;  %s949_s13 = smov (!%p241_p9), 94  }
  0x11   : > { %s950_s14 = smov (!%p241_p9), 95   ;;  %s779_s17 = sshll.u32 (!%p241_p9), %s1016_s28, 5 }
  0x12   : > { %s688_s21 = scalar_lea.hbm (!%p241_p9), %s1167_s7, %s779_s17 }
  0x13   : > { %v943_v0 = vmov 0   ;;  %v280_v1 = vld [vmem:[%s1162_s2] sm:$0xf]  ;;  %s273_s15 = scalar_select %p272_p10, %s1016_s28, 1  ;;  %vm286_vm0 = vcmask 64512   ;;  %v336_v5 = vlaneseq  ;;  %vm385_vm7 = vcmask 138240  }
  0x14   : > { %831 = vset.pattern.permute.xlu0 %v943_v0  ;;  %877 = vset.pattern.permute.xlu1 %v943_v0  ;;  %v279_v2 = vld [vmem:[%s1161_s1] sm:$0xf]  ;;  %v588_v57 = vld [vmem:[%s1166_s6 + $0x8] sm:$0xff]  ;;  %vm512_vm8 = vcmask 769024   ;;  %vm490_vm9 = vcmask 785408   ;;  %vm465_vm10 = vcmask 908288  }
  0x15   : > { %283 = vperm.xlu0 %831, %v280_v1   ;;  %878 = vset.pattern.permute.xlu2 %v943_v0  ;;  %s778_s16 = sshll.u32 %s273_s15, 4  ;;  %v337_v6 = vand.u32 127, %v336_v5  ;;  %s951_s15 = smov 112   ;;  %v525_v5 = vld [vmem:[%s1164_s4] sm:$0xf]  ;;  %vm515_vm11 = vcmask 1043456  }
  0x16   : > { %s276_s19 = scalar_lea.vmem %s1160_s0, %s778_s16  ;;  %s952_s16 = smov 127   ;;  %vm501_vm12 = vcmask 777216   ;;  %vm479_vm13 = vcmask 900096   ;;  %vm438_vm14 = vcmask 1031168   ;;  %vm454_vm15 = vcmask 916480  }
  0x17   : > { %v1054_v3 = vld [vmem:[%s276_s19] sm:$0xff]  ;;  %v1056_v4 = vld [vmem:[%s276_s19 + $0x8] sm:$0xff]  ;;  %v338_v9 = vadd.s32 128, %v337_v6  ;;  %v343_v11 = vand.u32 15, %v337_v6  ;;  %s691_s28 = sshll.u32 %s688_s21, 4  ;;  %s692_s28 = int_to_ptr.hbm [resolvable:$true] %s691_s28 }
  0x18   : > { %305 = vmatpush.msra.mxu2 %v1054_v3  ;;  %325 = vmatpush.msra.mxu1 %v1056_v4 }
  0x19   : > { %761 = vmatmul.msk.f32.vlgmr.msra.gmra.mxu2 %vm286_vm0, %v279_v2  ;;  %762 = vmatmul.msk.f32.vlgmr.msra.gmra.mxu1 %vm286_vm0, %v279_v2  ;;  %v350_v12 = vand.u32 15, %v338_v9  ;;  %vm371_vm2 = vcmp.eq.s32.totalorder %v343_v11, 0  ;;  %vm363_vm5 = vcmp.eq.s32.totalorder %v343_v11, 15  ;;  %vm425_vm0 = vcmask 1039360  }
  0x1b   : > { %vm364_vm3 = vcmp.eq.s32.totalorder %v350_v12, 15  ;;  %vm372_vm6 = vcmp.eq.s32.totalorder %v350_v12, 0 }
  0x87   : > { %v284_v7 = vpop.permute.xlu0 %283 }
  0x96   : > { %v327_v8 = vpop.f32.mrf.mxu1 }
  0x97   : > { %v328_v10 = vadd.f32 %v327_v8, %v284_v7 }
  0x99   : > { %v333_v13 = vmul.f32 0.01, %v328_v10  ;;  %vm331_vm1 = vcmp.ge.f32.partialorder %v328_v10, 0.0 }
  0x9b   : > { %v335_v16 = vsel %vm331_vm1, %v328_v10, %v333_v13  ;;  %vm531_vm1 = vcmask 293888  }
  0x9c   : > { %v307_v14 = vpop.f32.mrf.mxu2  ;;  %v370_v22 = vsel %vm364_vm3, 0.0, %v335_v16  ;;  %v378_v24 = vsel %vm372_vm6, 0.0, %v335_v16  ;;  %vm599_vm3 = vcmask 31744  }
  0x9d   : > { %v308_v15 = vadd.f32 %v307_v14, %v284_v7 }
  0x9f   : > { %v332_v17 = vmul.f32 0.01, %v308_v15  ;;  %vm330_vm4 = vcmp.ge.f32.partialorder %v308_v15, 0.0 }
  0xa1   : > { %v334_v18 = vsel %vm330_vm4, %v308_v15, %v332_v17 }
  0xa2   : > { %v377_v19 = vsel %vm371_vm2, 0.0, %v334_v18  ;;  %v832_v20 = vpack.i.bf16 %v335_v16, %v334_v18  ;;  %v369_v21 = vsel %vm363_vm5, 0.0, %v334_v18 }
  0xa3   : > { %405 = vrot.lane.b32.xlu1 %v377_v19, %s944_s22  ;;  %v837_v23 = vpack.i.bf16 %v370_v22, %v369_v21 }
  0xa4   : > { %833 = vrot.lane.b32.xlu0 %v832_v20, %s944_s22 }
  0xa5   : > { %838 = vrot.lane.b32.xlu2 %v837_v23, %s944_s22 }
  0xab   : > { %407 = vrot.lane.b32.xlu1 %v378_v24, %s944_s22 }
  0xff   : > { %v839_v25 = vpop.permute.xlu2 %838 }
 0x100   : > { %v841_v26 = vunpack.i.h.bf16 %v839_v25  ;;  %v840_v43 = vunpack.i.l.bf16 %v839_v25 }
 0x102   : > { %v391_v27 = vsel %vm385_vm7, %v841_v26, 0.0  ;;  %v1070_v46 = vsel %vm385_vm7, 0.0, %v840_v43  ;;  %v1073_v48 = vsel %vm385_vm7, %v840_v43, %v841_v26 }
 0x103   : > { %488 = vrot.lane.b32.xlu0 %v391_v27, %s945_s23  ;;  %v445_v49 = vrot.slane %v1070_v46, 4  ;;  %v446_v50 = vrot.slane %v1073_v48, 4  ;;  %v847_v51 = vpack.i.bf16 %v1073_v48, %v1070_v46  ;;  %v447_v53 = vrot.slane %v391_v27, 4 }
 0x105   : > { %v872_v52 = vpack.i.bf16 %v446_v50, %v445_v49  ;;  %v524_v50 = vld [vmem:[%s1163_s3] sm:$0xf] }
 0x115   : > { %v406_v28 = vpop.permute.xlu1 %405 }
 0x116   : > { %v834_v29 = vpop.permute.xlu0 %833  ;;  %v412_v40 = vsel %vm385_vm7, 0.0, %v406_v28 }
 0x117   : > { %v836_v30 = vunpack.i.h.bf16 %v834_v29  ;;  %v835_v35 = vunpack.i.l.bf16 %v834_v29  ;;  %v470_v55 = vrot.slane %v412_v40, 4 }
 0x119   : > { %v402_v31 = vsel %vm385_vm7, %v836_v30, 0.0  ;;  %v401_v36 = vsel %vm385_vm7, 0.0, %v835_v35  ;;  %v398_v37 = vsel %vm385_vm7, %v835_v35, %v836_v30 }
 0x11a   : > { %463 = vrot.lane.b32.xlu1 %v402_v31, %s946_s29  ;;  %v418_v38 = vrot.slane %v402_v31, 4  ;;  %v842_v41 = vpack.i.bf16 %v398_v37, %v401_v36  ;;  %v416_v44 = vrot.slane %v401_v36, 4  ;;  %v417_v45 = vrot.slane %v398_v37, 4 }
 0x11c   : > { %v857_v47 = vpack.i.bf16 %v417_v45, %v416_v44 }
 0x11d   : > { %v408_v32 = vpop.permute.xlu1 %407 }
 0x11e   : > { %v413_v33 = vsel %vm385_vm7, %v408_v32, 0.0  ;;  %v409_v39 = vsel %vm385_vm7, %v406_v28, %v408_v32 }
 0x11f   : > { %436 = vrot.lane.b32.xlu2 %v413_v33, %s947_s8  ;;  %v472_v34 = vrot.slane %v413_v33, 4  ;;  %v852_v42 = vpack.i.bf16 %v409_v39, %v412_v40  ;;  %v471_v54 = vrot.slane %v409_v39, 4 }
 0x121   : > { %477 = vrot.lane.b32.xlu0 %v472_v34, %s948_s9  ;;  %v862_v56 = vpack.i.bf16 %v471_v54, %v470_v55  ;;  %v587_v55 = vld [vmem:[%s1166_s6] sm:$0xff] }
 0x122   : > { %510 = vrot.lane.b32.xlu1 %v413_v33, %s949_s13 }
 0x127   : > { %499 = vrot.lane.b32.xlu2 %v418_v38, %s950_s14 }
 0x129   : > { %843 = vrot.lane.b32.xlu0 %v842_v41, %s946_s29  ;;  %s893_s29 = sshra.s32 %s692_s28, 4  ;;  %s894_s29 = int_to_ptr.hbm [resolvable:$true] %s893_s29 }
 0x12a   : > { %853 = vrot.lane.b32.xlu1 %v852_v42, %s947_s8  ;;  %s895_s8 = scalar_lea.hbm %s894_s29, 32  ;;  %p900_p0 = scmp.lt.s32.totalorder %s894_s29, %s1167_s7 }
 0x12b   : > { %p896_p11 = scmp.ne.s32.totalorder %s894_s29, %s895_s8 }
 0x12d   : > { %p897_p12 = pnand %p896_p11, %p1033_p5 }
 0x12f   : > { %506 = vrot.lane.b32.xlu2 %v412_v40, %s949_s13  ;;  %p898_p13 = pneg %p897_p12 }
 0x131   : > { %508 = vrot.lane.b32.xlu0 %v409_v39, %s949_s13 }
 0x132   : > { %858 = vrot.lane.b32.xlu1 %v857_v47, %s950_s14  ;;  %s899_s14 = scalar_lea.hbm %s1167_s7, 64 }
 0x133   : > { %p901_p1 = scmp.lt.s32.totalorder %s899_s14, %s895_s8 }
 0x135   : > { %p902_p2 = por %p901_p1, %p900_p0 }
 0x137   : > { %848 = vrot.lane.b32.xlu2 %v847_v51, %s945_s23  ;;  %p903_p3 = pnand %p902_p2, %p898_p13 }
 0x139   : > { %873 = vrot.lane.b32.xlu0 %v872_v52, %s951_s15 }
 0x13a   : > { %452 = vrot.lane.b32.xlu1 %v447_v53, %s951_s15  ;;  %s269_s15 = sand.u32 1, %s933_s25  }
 0x13b   : > { %s677_s23 = scalar_lea.sflag [#allocation3], %s269_s15 }
 0x13f   : > { %863 = vrot.lane.b32.xlu2 %v862_v56, %s948_s9 }
 0x141   : > { %423 = vrot.lane.b32.xlu0 %v418_v38, %s952_s16 }
 0x142   : > { %528 = vperm.xlu1 %877, %v525_v5  }
 0x147   : > { %868 = vrot.lane.b32.xlu2 %v857_v47, %s952_s16  ;;  %s758_s16 = sshll.u32 %s269_s15, 5 }
 0x148   : > { %s271_s18 = scalar_lea.vmem [#allocation2], %s758_s16 }
 0x149   : > { %596 = vperm.xlu0 %831, %v588_v57   ;;  %s689_s22 = sshll.u32 %s271_s18, 4  ;;  %s690_s22 = int_to_ptr.vmem [resolvable:$true] %s689_s22 }
 0x14f   : > { %591 = vperm.xlu2 %878, %v587_v55  }
 0x175   : > { %v489_v61 = vpop.permute.xlu0 %488 }
 0x179   : > { %v1084_v58 = vpop.permute.xlu2 %436 }
 0x181   : > { %v500_v59 = vpop.permute.xlu2 %499 }
 0x189   : > { %v507_v60 = vpop.permute.xlu2 %506 }
 0x18c   : > { %v464_v62 = vpop.permute.xlu1 %463 }
 0x191   : > { %v849_v63 = vpop.permute.xlu2 %848 }
 0x192   : > { %v851_v8 = vunpack.i.h.bf16 %v849_v63  ;;  %v850_v9 = vunpack.i.l.bf16 %v849_v63 }
 0x193   : > { %v478_v0 = vpop.permute.xlu0 %477 }
 0x194   : > { %v511_v1 = vpop.permute.xlu1 %510  ;;  %v491_v20 = vsel %vm490_vm9, %v850_v9, %v851_v8  ;;  %v492_v21 = vsel %vm490_vm9, %v851_v8, %v489_v61 }
 0x199   : > { %v864_v7 = vpop.permute.xlu2 %863 }
 0x19a   : > { %v866_v16 = vunpack.i.h.bf16 %v864_v7  ;;  %v865_v17 = vunpack.i.l.bf16 %v864_v7 }
 0x19b   : > { %v844_v2 = vpop.permute.xlu0 %843 }
 0x19c   : > { %v854_v6 = vpop.permute.xlu1 %853  ;;  %v846_v10 = vunpack.i.h.bf16 %v844_v2  ;;  %v845_v11 = vunpack.i.l.bf16 %v844_v2  ;;  %v480_v31 = vsel %vm479_vm13, %v865_v17, %v866_v16  ;;  %v481_v32 = vsel %vm479_vm13, %v866_v16, %v478_v0  ;;  %v586_v0 = vld [vmem:[%s1165_s5 + $0x8] sm:$0xff] }
 0x19d   : > { %v856_v29 = vunpack.i.h.bf16 %v854_v6  ;;  %v855_v30 = vunpack.i.l.bf16 %v854_v6 }
 0x19e   : > { %v466_v25 = vsel %vm465_vm10, %v845_v11, %v846_v10  ;;  %v467_v26 = vsel %vm465_vm10, %v846_v10, %v464_v62 }
 0x19f   : > { %v520_v35 = vsel %vm515_vm11, %v466_v25, %v480_v31  ;;  %v521_v36 = vsel %vm515_vm11, %v467_v26, %v481_v32  ;;  %v439_v41 = vsel %vm438_vm14, %v855_v30, %v856_v29  ;;  %v440_v44 = vsel %vm438_vm14, %v856_v29, %v1084_v58 }
 0x1a1   : > { %v869_v22 = vpop.permute.xlu2 %868 }
 0x1a2   : > { %v871_v33 = vunpack.i.h.bf16 %v869_v22  ;;  %v870_v34 = vunpack.i.l.bf16 %v869_v22 }
 0x1a3   : > { %v509_v12 = vpop.permute.xlu0 %508 }
 0x1a4   : > { %v859_v13 = vpop.permute.xlu1 %858  ;;  %v513_v14 = vsel %vm512_vm8, %v507_v60, %v509_v12  ;;  %v514_v15 = vsel %vm512_vm8, %v509_v12, %v511_v1  ;;  %v426_v45 = vsel %vm425_vm0, %v870_v34, %v871_v33  ;;  %v585_v60 = vld [vmem:[%s1165_s5] sm:$0xff] }
 0x1a5   : > { %v861_v18 = vunpack.i.h.bf16 %v859_v13  ;;  %v860_v19 = vunpack.i.l.bf16 %v859_v13  ;;  %763 = vmatpush.msk.msrb.mxu2 %vm515_vm11, %v513_v14  ;;  %765 = vmatpush.msk.msra.mxu3 %vm515_vm11, %v514_v15  ;;  %v516_v51 = vsel %vm515_vm11, %v1070_v46, %v426_v45 }
 0x1a7   : > { %v502_v23 = vsel %vm501_vm12, %v860_v19, %v861_v18  ;;  %v503_v24 = vsel %vm501_vm12, %v861_v18, %v500_v59 }
 0x1a8   : > { %v522_v27 = vsel %vm515_vm11, %v491_v20, %v502_v23  ;;  %v523_v28 = vsel %vm515_vm11, %v492_v21, %v503_v24 }
 0x1a9   : > { %551 = vmatpush.msrb.mxu2 %v522_v27  ;;  %571 = vmatpush.msra.mxu3 %v523_v28  ;;  %v592_v1 = vpop.permute.xlu2 %591 }
 0x1ab   : > { %552 = vmatpush.msrb.mxu2 %v520_v35  ;;  %572 = vmatpush.msra.mxu3 %v521_v36  ;;  %v874_v37 = vpop.permute.xlu0 %873 }
 0x1ac   : > { %v876_v38 = vunpack.i.h.bf16 %v874_v37  ;;  %v875_v39 = vunpack.i.l.bf16 %v874_v37  ;;  %v453_v40 = vpop.permute.xlu1 %452 }
 0x1ae   : > { %v456_v42 = vsel %vm454_vm15, %v876_v38, %v453_v40  ;;  %v455_v43 = vsel %vm454_vm15, %v875_v39, %v876_v38 }
 0x1af   : > { %v518_v47 = vsel %vm515_vm11, %v439_v41, %v455_v43  ;;  %v519_v49 = vsel %vm515_vm11, %v440_v44, %v456_v42 }
 0x1b0   : > { %553 = vmatpush.msrb.mxu2 %v518_v47  ;;  %573 = vmatpush.msra.mxu3 %v519_v49 }
 0x1b2   : > { %554 = vmatpush.msrb.mxu2 %v516_v51 }
 0x1b3   : > { %v424_v52 = vpop.permute.xlu0 %423  ;;  %764 = vmatmul.msk.f32.vlgmr.msrb.gmra.mxu2 %vm531_vm1, %v524_v50 }
 0x1b4   : > { %v427_v53 = vsel %vm425_vm0, %v871_v33, %v424_v52  ;;  %v529_v56 = vpop.permute.xlu1 %528 }
 0x1b5   : > { %v517_v54 = vsel %vm515_vm11, %v1073_v48, %v427_v53 }
 0x1b6   : > { %574 = vmatpush.msra.mxu3 %v517_v54 }
 0x1b7   : > { %766 = vmatmul.msk.f32.vlgmr.msra.gmra.mxu3 %vm531_vm1, %v524_v50 }
 0x1bb   : > { %v597_v12 = vpop.permute.xlu0 %596 }
 0x236   : > { %v556_v57 = vpop.f32.mrf.mxu2 }
 0x237   : > { %v557_v58 = vadd.f32 %v556_v57, %v529_v56 }
 0x239   : > { %vm579_vm2 = vcmp.ge.f32.partialorder %v557_v58, 0.0  ;;  %v581_v46 = vmul.f32 0.01, %v557_v58 }
 0x23a   : > { %v576_v59 = vpop.f32.mrf.mxu3 }
 0x23b   : > { %v577_v48 = vadd.f32 %v576_v59, %v529_v56  ;;  %v583_v61 = vsel %vm579_vm2, %v557_v58, %v581_v46 }
 0x23c   : > { %767 = vmatpush.msk.msra.mxu0 %vm515_vm11, %v583_v61 }
 0x23d   : > { %v582_v62 = vmul.f32 0.01, %v577_v48  ;;  %768 = vmatmul.msk.f32.vlgmr.msra.gmra.mxu0 %vm599_vm3, %v585_v60  ;;  %vm580_vm4 = vcmp.ge.f32.partialorder %v577_v48, 0.0 }
 0x23f   : > { %v584_v63 = vsel %vm580_vm4, %v577_v48, %v582_v62 }
 0x240   : > { %770 = vmatpush.msk.msrb.mxu1 %vm515_vm11, %v584_v63 }
 0x241   : > { %771 = vmatmul.msk.f32.vlgmr.msrb.gmra.mxu1 %vm599_vm3, %v585_v60 }
 0x245   : > { %769 = vmatmul.msk.f32.gmra.mxu0 %vm599_vm3, %v586_v0 }
 0x249   : > { %772 = vmatmul.msk.f32.gmra.mxu1 %vm599_vm3, %v586_v0 }
 0x2ba   : > { %v629_v2 = vpop.f32.mrf.mxu0 }
 0x2bb   : > { %v630_v5 = vadd.f32 %v629_v2, %v592_v1 }
 0x2bd   : > { %v658_v6 = vadd.f32 %v630_v5, %v1054_v3 }
 0x2be   : > { %v652_v7 = vpop.f32.mrf.mxu1 }
 0x2bf   : > { %v653_v8 = vadd.f32 %v652_v7, %v592_v1  ;;  %vm660_vm5 = vcmp.ge.f32.partialorder %v658_v6, 0.0  ;;  %v662_v9 = vmul.f32 0.01, %v658_v6 }
 0x2c1   : > { %v659_v10 = vadd.f32 %v653_v8, %v1056_v4  ;;  %v664_v11 = vsel %vm660_vm5, %v658_v6, %v662_v9 }
 0x2c2   : > { %v632_v13 = vpop.f32.mrf.mxu0  ;;  %666 = vst [vmem:[%s271_s18] sm:$0xff] %v664_v11 }
 0x2c3   : > { %v633_v14 = vadd.f32 %v632_v13, %v597_v12  ;;  %vm661_vm6 = vcmp.ge.f32.partialorder %v659_v10, 0.0  ;;  %v663_v15 = vmul.f32 0.01, %v659_v10 }
 0x2c5   : > { %vm668_vm7 = vcmp.ge.f32.partialorder %v633_v14, 0.0  ;;  %v670_v3 = vmul.f32 0.01, %v633_v14  ;;  %v665_v16 = vsel %vm661_vm6, %v659_v10, %v663_v15 }
 0x2c6   : > { %667 = vst [vmem:[%s271_s18 + $0x8] sm:$0xff] %v665_v16  ;;  %v655_v17 = vpop.f32.mrf.mxu1 }
 0x2c7   : > { %v672_v4 = vsel %vm668_vm7, %v633_v14, %v670_v3  ;;  %v656_v18 = vadd.f32 %v655_v17, %v597_v12 }
 0x2c8   : > { %674 = vst [vmem:[%s271_s18 + $0x10] sm:$0xff] %v672_v4 }
 0x2c9   : > { %vm669_vm8 = vcmp.ge.f32.partialorder %v656_v18, 0.0  ;;  %v671_v19 = vmul.f32 0.01, %v656_v18 }
 0x2cb   : > { %v673_v20 = vsel %vm669_vm8, %v656_v18, %v671_v19 }
 0x2cc   : > { %675 = vst [vmem:[%s271_s18 + $0x18] sm:$0xff] %v673_v20 }
 0x2cd   : > { %906 = shalt.err (!%p903_p3)
}
 0x2ce   : > { %s953_s15 = smov 256   ;;  %s954_s18 = smov 16  }
 0x2cf   : > { %780 = dma.vmem_to_hbm [thread:$0]  (%p1033_p5), %s690_s22, 512, %s692_s28, %s677_s23, %s953_s15, %s953_s15, %s954_s18  }
 0x2d0 PF: > { %p786_p4 = scmp.ge.s32.totalorder %s941_s27, 2  ;;  %s706_s19 = sand.u32 1, %s929_s24  }
 0x2d1   : > { %s707_s20 = scalar_lea.sflag [#allocation3], %s706_s19 }
 0x2d2   : > { %p783_p7 = pnand %p786_p4, %p1037_p6 }
 0x2d4   : > { %p784_p8 = pneg %p783_p7 }
 0x2d6   : > { %924 = dma.done.wait (%p784_p8), %s707_s20, 512  }
 0x2d7   : > { %926 = vsyncadd (%p784_p8), %s707_s20, 4294966784  ;;  %p17_p9 = scmp.ge.s32.totalorder %s1020_s30, 4   ;;  %s1170_s24 = smov %s933_s25 }
 0x2d8   : > { %s1171_s25 = smov %s937_s26  ;;  %s1172_s26 = smov %s1031_s10 }
 0x2d9   : > { %s1173_s27 = smov %s1020_s30  ;;  %19 = sbr.rel (!%p17_p9) target bundleno = 3 (0x3), region = 83 }
 0x2de   :  { %713 = vsyncpa [#allocation3], 1 }
 0x2df   :  { %715 = vsyncpa [#allocation3 + $0x1], 1 }

</bundles_post_ra>
